<compile_context>
chip_gen: v6e
topology: v6e:2x2x1
jax: 0.10.0
libtpu: 0.0.40
codegen_flags: <defaults>
</compile_context>

<pallas_src>
import jax
import jax.numpy as jnp
from jax.experimental import pallas as pl
from jax.experimental.pallas import tpu as pltpu

HIDDEN = 512
HEAD_DIM = 3 + 2 + 1          # fcn_r (3) + fcn_xy (2) + fcn_z (1)
OUT_DIM = 1 + HEAD_DIM        # [w, r_xyz, xy, z]


def _round_up(n, m):
    return ((n + m - 1) // m) * m


def _cdiv(a, b):
    return (a + b - 1) // b


def _choose_tm(batch):
    if batch <= 256:
        # Single grid step; keep the tile a multiple of 32 (bf16 sublane pack)
        # so intermediate bf16 layouts stay clean, with minimal wasted rows.
        return max(32, _round_up(batch, 32))
    # >= 2 grid steps so v7x can shard the batch axis across both TensorCores;
    # cap at 1024 so the (tm,512) f32 intermediate + buffers fit v5e scoped VMEM.
    return min(1024, max(256, _round_up(_cdiv(batch, 2), 256)))


def _linear_kernel(x_ref, w1_ref, b1_ref, wh_ref, bh_ref, out_ref):
    # In-kernel f32 -> bf16 cast (VPU work hidden under the MXU time).
    x = x_ref[...].astype(jnp.bfloat16)

    # First GEMM: bf16 operands, f32 accumulation on the MXU.
    h = jnp.dot(x, w1_ref[...], preferred_element_type=jnp.float32)
    h = jnp.maximum(h + b1_ref[...], 0.0)                 # bias + ReLU (VPU)

    # Second (tiny) GEMM + head math.
    heads = jnp.dot(h.astype(wh_ref.dtype), wh_ref[...],
                    preferred_element_type=jnp.float32)
    heads = heads + bh_ref[...]                           # (TM, 6) f32

    r_xyz = heads[:, 0:3]
    norm = jnp.sqrt(jnp.sum(r_xyz * r_xyz, axis=1, keepdims=True))
    w = 1.0 - norm                                        # (TM, 1)

    # Two direct stores; no lane-axis concatenate.
    out_ref[:, 0:1] = w.astype(out_ref.dtype)
    out_ref[:, 1:OUT_DIM] = heads.astype(out_ref.dtype)


def linear_forward(features, w1, b1, wh, bh, *, tm=None):
    """features: any shape with leading batch dim; flattened to (B, in_channels)."""
    batch = features.shape[0]
    in_channels = w1.shape[0]
    x = features.reshape(batch, in_channels)              # streamed as-is (f32)
    out_dtype = x.dtype

    w1_bf = w1.astype(jnp.bfloat16)
    wh_bf = wh.astype(jnp.bfloat16)
    b1_2d = b1.reshape(1, HIDDEN).astype(jnp.float32)
    bh_2d = bh.reshape(1, HEAD_DIM).astype(jnp.float32)

    if tm is None:
        tm = _choose_tm(batch)
    grid = (_cdiv(batch, tm),)

    # Per-step VMEM footprint (double-buffered x/out, resident weights,
    # f32 + bf16 hidden intermediates), with headroom.
    vmem_bytes = (
        2 * tm * in_channels * 4          # x tile, double-buffered, f32
        + 2 * in_channels * HIDDEN * 2    # W1 (bf16) buffers
        + 2 * HIDDEN * 4                  # b1
        + 2 * HIDDEN * HEAD_DIM * 2       # Wh
        + 2 * HEAD_DIM * 4                # bh
        + 2 * tm * OUT_DIM * 4            # out tile, double-buffered
        + tm * HIDDEN * (4 + 2)           # h (f32) + bf16 copy
        + tm * OUT_DIM * 8                # heads + small temporaries
    )
    vmem_limit = int(min(100 << 20, max(int(1.5 * vmem_bytes) + (2 << 20), 32 << 20)))

    cost = pl.CostEstimate(
        flops=2 * batch * in_channels * HIDDEN + 2 * batch * HIDDEN * HEAD_DIM,
        transcendentals=batch,  # per-row sqrt
        bytes_accessed=(batch * in_channels * 4
                        + in_channels * HIDDEN * 2
                        + HIDDEN * HEAD_DIM * 2
                        + (HIDDEN + HEAD_DIM) * 4
                        + batch * OUT_DIM * 4),
    )

    out = pl.pallas_call(
        _linear_kernel,
        grid=grid,
        out_shape=jax.ShapeDtypeStruct((batch, OUT_DIM), jnp.float32),
        in_specs=[
            # x: tiled over batch, double-buffered by the pipeline (f32 in HBM).
            pl.BlockSpec((tm, in_channels), lambda i: (i, 0)),
            # Weights / biases: same block every step -> fetched once, resident.
            pl.BlockSpec((in_channels, HIDDEN), lambda i: (0, 0)),
            pl.BlockSpec((1, HIDDEN), lambda i: (0, 0)),
            pl.BlockSpec((HIDDEN, HEAD_DIM), lambda i: (0, 0)),
            pl.BlockSpec((1, HEAD_DIM), lambda i: (0, 0)),
        ],
        out_specs=pl.BlockSpec((tm, OUT_DIM), lambda i: (i, 0)),
        compiler_params=pltpu.CompilerParams(
            dimension_semantics=("parallel",),
            vmem_limit_bytes=vmem_limit),
        cost_estimate=cost,
    )(x, w1_bf, b1_2d, wh_bf, bh_2d)

    slab = out.astype(out_dtype)
    out_r = slab[:, 0:4]   # [w, r_xyz]
    out_t = slab[:, 4:7]   # [xy, z]
    return out_r, out_t


def init_params(key, in_channels):
    """Deterministic init mimicking nn.Linear's U(-1/sqrt(fan_in), 1/sqrt(fan_in))."""
    k = jax.random.split(key, 8)

    def lin(kw, kb, fan_in, fan_out):
        bound = 1.0 / jnp.sqrt(fan_in)
        w = jax.random.uniform(kw, (fan_in, fan_out), jnp.float32, -bound, bound)
        b = jax.random.uniform(kb, (fan_out,), jnp.float32, -bound, bound)
        return w, b

    w1, b1 = lin(k[0], k[1], in_channels, HIDDEN)
    wr, br = lin(k[2], k[3], HIDDEN, 3)
    wxy, bxy = lin(k[4], k[5], HIDDEN, 2)
    wz, bz = lin(k[6], k[7], HIDDEN, 1)
    # Fuse the three heads into a single (512, 6) matmul: [r | xy | z].
    wh = jnp.concatenate([wr, wxy, wz], axis=1)
    bh = jnp.concatenate([br, bxy, bz], axis=0)
    return w1, b1, wh, bh


if __name__ == "__main__":
    batch = 8
    in_channels = 32

    key = jax.random.PRNGKey(0)
    k_feat, k_param = jax.random.split(key)
    features = jax.random.normal(k_feat, (batch, in_channels), jnp.float32)
    w1, b1, wh, bh = init_params(k_param, in_channels)

    out_r, out_t = jax.jit(linear_forward)(features, w1, b1, wh, bh)
    jax.block_until_ready((out_r, out_t))

    assert out_r.shape == (batch, 4) and out_t.shape == (batch, 3)
    assert bool(jnp.all(jnp.isfinite(out_r))) and bool(jnp.all(jnp.isfinite(out_t)))
    print("KERNEL_OK")
</pallas_src>

<mosaic_0001>
module attributes {stable_mosaic.version = 11 : i64} {
  func.func @_linear_kernel(%arg0: i32, %arg1: memref<32x32xf32, #tpu.memory_space<vmem>>, %arg2: memref<32x512xbf16, #tpu.memory_space<vmem>>, %arg3: memref<1x512xf32, #tpu.memory_space<vmem>>, %arg4: memref<512x6xbf16, #tpu.memory_space<vmem>>, %arg5: memref<1x6xf32, #tpu.memory_space<vmem>>, %arg6: memref<32x7xf32, #tpu.memory_space<vmem>>) attributes {dimension_semantics = [#tpu.dimension_semantics<parallel>], iteration_bounds = array<i64: 1>, scalar_prefetch = 0 : i64, scratch_operands = 0 : i64, tpu.core_type = #tpu.core_type<tc>, window_params = [{transform_indices = @transform_0, window_bounds = array<i64: 32, 32>}, {pipeline_mode = #tpu.pipeline_mode<synchronous>, transform_indices = @transform_1, window_bounds = array<i64: 32, 512>}, {pipeline_mode = #tpu.pipeline_mode<synchronous>, transform_indices = @transform_2, window_bounds = array<i64: 1, 512>}, {pipeline_mode = #tpu.pipeline_mode<synchronous>, transform_indices = @transform_3, window_bounds = array<i64: 512, 6>}, {pipeline_mode = #tpu.pipeline_mode<synchronous>, transform_indices = @transform_4, window_bounds = array<i64: 1, 6>}, {transform_indices = @transform_5, window_bounds = array<i64: 32, 7>}]} {
    %c0 = arith.constant 0 : index
    %c0_0 = arith.constant 0 : index
    %0 = vector.load %arg1[%c0, %c0_0] : memref<32x32xf32, #tpu.memory_space<vmem>>, vector<32x32xf32>
    %1 = arith.truncf %0 : vector<32x32xf32> to vector<32x32xbf16>
    %c0_1 = arith.constant 0 : index
    %c0_2 = arith.constant 0 : index
    %2 = vector.load %arg2[%c0_1, %c0_2] : memref<32x512xbf16, #tpu.memory_space<vmem>>, vector<32x512xbf16>
    %cst = arith.constant dense<0.000000e+00> : vector<32x512xf32>
    %3 = tpu.matmul %1, %2, %cst {dimension_numbers = #tpu.dot_dimension_numbers<[1], [0], [0], [1], [0, 0, 1, 1], [], []>} : vector<32x32xbf16>, vector<32x512xbf16>, vector<32x512xf32> -> vector<32x512xf32>
    %c0_3 = arith.constant 0 : index
    %c0_4 = arith.constant 0 : index
    %4 = vector.load %arg3[%c0_3, %c0_4] : memref<1x512xf32, #tpu.memory_space<vmem>>, vector<1x512xf32>
    %5 = vector.broadcast %4 : vector<1x512xf32> to vector<32x512xf32>
    %6 = arith.addf %3, %5 : vector<32x512xf32>
    %cst_5 = arith.constant 0.000000e+00 : f32
    %7 = vector.broadcast %cst_5 : f32 to vector<32x512xf32>
    %8 = arith.maximumf %6, %7 : vector<32x512xf32>
    %9 = arith.truncf %8 : vector<32x512xf32> to vector<32x512xbf16>
    %c0_6 = arith.constant 0 : index
    %c0_7 = arith.constant 0 : index
    %10 = vector.load %arg4[%c0_6, %c0_7] : memref<512x6xbf16, #tpu.memory_space<vmem>>, vector<512x6xbf16>
    %cst_8 = arith.constant dense<0.000000e+00> : vector<32x6xf32>
    %11 = tpu.matmul %9, %10, %cst_8 {dimension_numbers = #tpu.dot_dimension_numbers<[1], [0], [0], [1], [0, 0, 1, 1], [], []>} : vector<32x512xbf16>, vector<512x6xbf16>, vector<32x6xf32> -> vector<32x6xf32>
    %c0_9 = arith.constant 0 : index
    %c0_10 = arith.constant 0 : index
    %12 = vector.load %arg5[%c0_9, %c0_10] : memref<1x6xf32, #tpu.memory_space<vmem>>, vector<1x6xf32>
    %13 = vector.broadcast %12 : vector<1x6xf32> to vector<32x6xf32>
    %14 = arith.addf %11, %13 : vector<32x6xf32>
    %15 = vector.extract_strided_slice %14 {offsets = [0, 0], sizes = [32, 3], strides = [1, 1]} : vector<32x6xf32> to vector<32x3xf32>
    %16 = arith.mulf %15, %15 : vector<32x3xf32>
    %cst_11 = arith.constant dense<0.000000e+00> : vector<32xf32>
    %17 = vector.multi_reduction <add>, %16, %cst_11 [1] : vector<32x3xf32> to vector<32xf32>
    %18 = vector.shape_cast %17 : vector<32xf32> to vector<32x1xf32>
    %19 = math.sqrt %18 : vector<32x1xf32>
    %cst_12 = arith.constant 1.000000e+00 : f32
    %20 = vector.broadcast %cst_12 : f32 to vector<32x1xf32>
    %21 = arith.subf %20, %19 : vector<32x1xf32>
    %c0_13 = arith.constant 0 : index
    %c0_14 = arith.constant 0 : index
    %22 = vector.load %arg6[%c0_13, %c0_14] : memref<32x7xf32, #tpu.memory_space<vmem>>, vector<32x1xf32>
    tpu.vector_store %arg6[%c0_13, %c0_14], %21 {strides = array<i32>} : memref<32x7xf32, #tpu.memory_space<vmem>>, vector<32x1xf32>,
    %c0_15 = arith.constant 0 : index
    %c1 = arith.constant 1 : index
    %23 = vector.load %arg6[%c0_15, %c1] : memref<32x7xf32, #tpu.memory_space<vmem>>, vector<32x6xf32>
    tpu.vector_store %arg6[%c0_15, %c1], %14 {strides = array<i32>} : memref<32x7xf32, #tpu.memory_space<vmem>>, vector<32x6xf32>,
    return
  }
  func.func @transform_0(%arg0: i32) -> (i32, i32) {
    %c0_i32 = arith.constant 0 : i32
    %c0_i32_0 = arith.constant 0 : i32
    return %arg0, %c0_i32 : i32, i32
  }
  func.func @transform_1(%arg0: i32) -> (i32, i32) {
    %c0_i32 = arith.constant 0 : i32
    %c0_i32_0 = arith.constant 0 : i32
    %c0_i32_1 = arith.constant 0 : i32
    return %c0_i32, %c0_i32_0 : i32, i32
  }
  func.func @transform_2(%arg0: i32) -> (i32, i32) {
    %c0_i32 = arith.constant 0 : i32
    %c0_i32_0 = arith.constant 0 : i32
    %c0_i32_1 = arith.constant 0 : i32
    return %c0_i32, %c0_i32_0 : i32, i32
  }
  func.func @transform_3(%arg0: i32) -> (i32, i32) {
    %c0_i32 = arith.constant 0 : i32
    %c0_i32_0 = arith.constant 0 : i32
    %c0_i32_1 = arith.constant 0 : i32
    return %c0_i32, %c0_i32_0 : i32, i32
  }
  func.func @transform_4(%arg0: i32) -> (i32, i32) {
    %c0_i32 = arith.constant 0 : i32
    %c0_i32_0 = arith.constant 0 : i32
    %c0_i32_1 = arith.constant 0 : i32
    return %c0_i32, %c0_i32_0 : i32, i32
  }
  func.func @transform_5(%arg0: i32) -> (i32, i32) {
    %c0_i32 = arith.constant 0 : i32
    %c0_i32_0 = arith.constant 0 : i32
    return %arg0, %c0_i32 : i32, i32
  }
}

</mosaic_0001>

<bundles_post_ra>
// kernel: linear_forward.1
= control target key start
LH: loop header
LB: loop body
LE: loop exit
PB: predicated region body
PF: predicated region fallthrough
CT: control target
= control target key end

     0   :  { %v866_v2 = vmov 0   ;;  %vm97_vm0 = vcmask 261120   ;;  %v37_v47 = vlaneseq  ;;  %vm599_vm1 = vcmask 23552   ;;  %s1047_s0 = inlined_call_operand.vmem [shape: f32[8,32], index: 0, kind: input, shape index: {}]   ;;  %s1048_s1 = inlined_call_operand.vmem [shape: bf16[32,512], index: 1, kind: input, shape index: {}]   ;;  %s1049_s2 = inlined_call_operand.vmem [shape: f32[1,512], index: 2, kind: input, shape index: {}]   ;;  %s1050_s3 = inlined_call_operand.vmem [shape: bf16[512,6], index: 3, kind: input, shape index: {}]   ;;  %s1051_s4 = inlined_call_operand.vmem [shape: f32[1,6], index: 4, kind: input, shape index: {}]   ;;  %s1052_s5 = inlined_call_operand.vmem [shape: f32[8,7], index: 5, kind: output, shape index: {}]  }
   0x1   :  { %v814_v0 = vld [vmem:[%s1048_s1 + $0x24] ss:$16 sps:$4 sm:$0xff]   ;;  %v816_v1 = vld [vmem:[%s1048_s1 + $0x2c] ss:$16 sps:$4 sm:$0xff]   ;;  %136 = vmatprep.mubr.bf16.mxu0 %v866_v2  ;;  %189 = vmatprep.mubr.bf16.mxu1 %v866_v2  ;;  %v818_v3 = vld [vmem:[%s1048_s1 + $0x20] ss:$16 sps:$4 sm:$0xff]  }
   0x2   :  { %116 = vmatprep.subr.bf16.mxu0 %v814_v0  ;;  %v819_v4 = vld [vmem:[%s1048_s1 + $0x28] ss:$16 sps:$4 sm:$0xff]   ;;  %169 = vmatprep.subr.bf16.mxu1 %v816_v1  ;;  %v820_v5 = vld [vmem:[%s1048_s1 + $0x4] ss:$16 sps:$4 sm:$0xff]   ;;  %v822_v6 = vld [vmem:[%s1048_s1 + $0xc] ss:$16 sps:$4 sm:$0xff]  }
   0x3   :  { %117 = vmatpush1.bf16.msra.mxu0 %v818_v3  ;;  %170 = vmatpush1.bf16.msra.mxu1 %v819_v4  ;;  %v824_v7 = vld [vmem:[%s1048_s1] ss:$16 sps:$4 sm:$0xff]   ;;  %v825_v8 = vld [vmem:[%s1048_s1 + $0x8] ss:$16 sps:$4 sm:$0xff]   ;;  %v38_v48 = vshrl.u32 %v37_v47, 7  ;;  %vm644_vm4 = vcmask 7168  }
   0x4   :  { %118 = vmatprep.subr.bf16.mxu0 %v820_v5  ;;  %v21_v9 = vld [vmem:[%s1047_s0] sm:$0xff]  ;;  %v22_v10 = vld [vmem:[%s1047_s0 + $0x8] sm:$0xff]  ;;  %171 = vmatprep.subr.bf16.mxu1 %v822_v6  ;;  %v826_v12 = vld [vmem:[%s1050_s3 + $0x78] sm:$0xff]   ;;  %vm665_vm5 = vcmask 56328  }
   0x5   :  { %v25_v11 = vpack.c.bf16 %v22_v10, %v21_v9  ;;  %v827_v13 = vld [vmem:[%s1050_s3 + $0xf8] sm:$0xff]   ;;  %v23_v15 = vld [vmem:[%s1047_s0 + $0x10] sm:$0xff]  ;;  %v834_v23 = vld [vmem:[%s1050_s3 + $0x68] sm:$0xff]   ;;  %v43_v49 = vsub.s32 1, %v38_v48  ;;  %v51_v50 = vsub.s32 3, %v38_v48  ;;  %v39_v51 = vsub.s32 0, %v38_v48 }
   0x6   :  { %v828_v14 = vld [vmem:[%s1050_s3 + $0x38] sm:$0xff]   ;;  %v830_v18 = vld [vmem:[%s1050_s3 + $0x70] sm:$0xff]   ;;  %v835_v24 = vld [vmem:[%s1050_s3 + $0xe8] sm:$0xff]   ;;  %v47_v52 = vsub.s32 2, %v38_v48 }
   0x7   :  { %119 = vmatpush1.bf16.msra.mxu0 %v824_v7  ;;  %172 = vmatpush1.bf16.msra.mxu1 %v825_v8  ;;  %v24_v16 = vld [vmem:[%s1047_s0 + $0x18] sm:$0xff]  ;;  %v831_v19 = vld [vmem:[%s1050_s3 + $0xf0] sm:$0xff]   ;;  %v836_v25 = vld [vmem:[%s1050_s3 + $0x28] sm:$0xff]  }
   0x8   :  { %756 = vmatprep.subr.bf16.mxu0 %v826_v12  ;;  %784 = vmatprep.subr.bf16.mxu1 %v827_v13  ;;  %v829_v17 = vld [vmem:[%s1050_s3 + $0xb8] sm:$0xff]   ;;  %v832_v20 = vld [vmem:[%s1050_s3 + $0x30] sm:$0xff]   ;;  %v26_v22 = vpack.c.bf16 %v24_v16, %v23_v15  ;;  %v837_v26 = vld [vmem:[%s1050_s3 + $0xa8] sm:$0xff]  }
   0x9   :  { %v833_v21 = vld [vmem:[%s1050_s3 + $0xb0] sm:$0xff]   ;;  %v838_v27 = vld [vmem:[%s1050_s3 + $0x60] sm:$0xff]   ;;  %v842_v31 = vld [vmem:[%s1050_s3 + $0x58] sm:$0xff]  }
   0xa   :  { %719 = vmatmul.mubr.msk.bf16.vlgmr.msra.gmra.mxu0 %vm97_vm0, %v25_v11  ;;  %721 = vmatmul.mubr.msk.bf16.vlgmr.msra.gmra.mxu1 %vm97_vm0, %v25_v11  ;;  %v839_v28 = vld [vmem:[%s1050_s3 + $0xe0] sm:$0xff]   ;;  %v843_v32 = vld [vmem:[%s1050_s3 + $0xd8] sm:$0xff]   ;;  %v846_v35 = vld [vmem:[%s1050_s3 + $0x50] sm:$0xff]  }
   0xb   :  { %146 = vmatprep.mubr.bf16.mxu0 %v866_v2  ;;  %199 = vmatprep.mubr.bf16.mxu1 %v866_v2  ;;  %v840_v29 = vld [vmem:[%s1050_s3 + $0x20] sm:$0xff]   ;;  %v844_v33 = vld [vmem:[%s1050_s3 + $0x18] sm:$0xff]   ;;  %v847_v36 = vld [vmem:[%s1050_s3 + $0xd0] sm:$0xff]  }
   0xc   :  { %757 = vmatpush3.bf16.msra.mxu0 %v828_v14  ;;  %785 = vmatpush3.bf16.msra.mxu1 %v829_v17  ;;  %v841_v30 = vld [vmem:[%s1050_s3 + $0xa0] sm:$0xff]   ;;  %v845_v34 = vld [vmem:[%s1050_s3 + $0x98] sm:$0xff]   ;;  %v848_v37 = vld [vmem:[%s1050_s3 + $0x10] sm:$0xff]  }
   0xd   :  { %758 = vmatprep.subr.bf16.mxu0 %v830_v18  ;;  %786 = vmatprep.subr.bf16.mxu1 %v831_v19  ;;  %v849_v38 = vld [vmem:[%s1050_s3 + $0x90] sm:$0xff]   ;;  %v850_v39 = vld [vmem:[%s1050_s3 + $0x48] sm:$0xff]   ;;  %v854_v43 = vld [vmem:[%s1050_s3 + $0x40] sm:$0xff]  }
   0xe   :  { %v851_v40 = vld [vmem:[%s1050_s3 + $0xc8] sm:$0xff]   ;;  %v855_v44 = vld [vmem:[%s1050_s3 + $0xc0] sm:$0xff]  }
   0xf   :  { %v852_v41 = vld [vmem:[%s1050_s3 + $0x8] sm:$0xff]   ;;  %v856_v45 = vld [vmem:[%s1050_s3] sm:$0xff]  }
  0x10   :  { %759 = vmatpush3.bf16.msra.mxu0 %v832_v20  ;;  %787 = vmatpush3.bf16.msra.mxu1 %v833_v21  ;;  %v853_v42 = vld [vmem:[%s1050_s3 + $0x88] sm:$0xff]   ;;  %v857_v46 = vld [vmem:[%s1050_s3 + $0x80] sm:$0xff]  }
  0x11   :  { %760 = vmatprep.subr.bf16.mxu0 %v834_v23  ;;  %788 = vmatprep.subr.bf16.mxu1 %v835_v24  ;;  %v35_v53 = vld [vmem:[%s1049_s2] sm:$0xf] }
  0x12   :  { %720 = vmatmul.mubr.msk.bf16.gmra.mxu0 %vm97_vm0, %v26_v22  ;;  %722 = vmatmul.mubr.msk.bf16.gmra.mxu1 %vm97_vm0, %v26_v22  ;;  %v44_v56 = vrot.slane %v35_v53, %v43_v49  ;;  %v52_v57 = vrot.slane %v35_v53, %v51_v50  ;;  %v40_v58 = vrot.slane %v35_v53, %v39_v51 }
  0x13   :  { %v48_v59 = vrot.slane %v35_v53, %v47_v52  ;;  %v723_v52 = vld [vmem:[%s1051_s4] ss:$0 sm:$0xff]  ;;  %s867_s4 = smov 1  }
  0x14   :  { %761 = vmatpush3.bf16.msra.mxu0 %v836_v25  ;;  %789 = vmatpush3.bf16.msra.mxu1 %v837_v26 }
  0x15   :  { %762 = vmatprep.subr.bf16.mxu0 %v838_v27  ;;  %790 = vmatprep.subr.bf16.mxu1 %v839_v28 }
  0x18   :  { %763 = vmatpush3.bf16.msra.mxu0 %v840_v29  ;;  %791 = vmatpush3.bf16.msra.mxu1 %v841_v30 }
  0x19   :  { %764 = vmatprep.subr.bf16.mxu0 %v842_v31  ;;  %792 = vmatprep.subr.bf16.mxu1 %v843_v32 }
  0x1c   :  { %765 = vmatpush3.bf16.msra.mxu0 %v844_v33  ;;  %793 = vmatpush3.bf16.msra.mxu1 %v845_v34 }
  0x1d   :  { %766 = vmatprep.subr.bf16.mxu0 %v846_v35  ;;  %794 = vmatprep.subr.bf16.mxu1 %v847_v36 }
  0x20   :  { %767 = vmatpush3.bf16.msra.mxu0 %v848_v37  ;;  %795 = vmatpush3.bf16.msra.mxu1 %v849_v38 }
  0x21   :  { %768 = vmatprep.subr.bf16.mxu0 %v850_v39  ;;  %796 = vmatprep.subr.bf16.mxu1 %v851_v40 }
  0x24   :  { %769 = vmatpush3.bf16.msra.mxu0 %v852_v41  ;;  %797 = vmatpush3.bf16.msra.mxu1 %v853_v42 }
  0x25   :  { %770 = vmatprep.subr.bf16.mxu0 %v854_v43  ;;  %798 = vmatprep.subr.bf16.mxu1 %v855_v44 }
  0x28   :  { %771 = vmatpush3.bf16.msra.mxu0 %v856_v45  ;;  %799 = vmatpush3.bf16.msra.mxu1 %v857_v46 }
  0xca   :  { %v138_v54 = vpop.f32.mrf.mxu0  ;;  %v191_v55 = vpop.f32.mrf.mxu1 }
  0xcb   :  { %v139_v4 = vadd.f32 %v138_v54, %v40_v58  ;;  %v192_v5 = vadd.f32 %v191_v55, %v48_v59 }
  0xcc   :  { %v140_v60 = vpop.f32.mrf.mxu0  ;;  %v193_v61 = vpop.f32.mrf.mxu1 }
  0xcd   :  { %v141_v0 = vadd.f32 %v140_v60, %v44_v56  ;;  %v194_v1 = vadd.f32 %v193_v61, %v52_v57  ;;  %v210_v18 = vmax.f32 %v139_v4, 0.0  ;;  %v212_v19 = vmax.f32 %v192_v5, 0.0 }
  0xce   :  { %v142_v62 = vpop.f32.mrf.mxu0  ;;  %v195_v63 = vpop.f32.mrf.mxu1 }
  0xcf   :  { %v143_v2 = vadd.f32 %v142_v62, %v40_v58  ;;  %v196_v3 = vadd.f32 %v195_v63, %v48_v59  ;;  %v211_v14 = vmax.f32 %v141_v0, 0.0  ;;  %v213_v15 = vmax.f32 %v194_v1, 0.0 }
  0xd0   :  { %v144_v6 = vpop.f32.mrf.mxu0  ;;  %v197_v7 = vpop.f32.mrf.mxu1 }
  0xd1   :  { %v145_v8 = vadd.f32 %v144_v6, %v44_v56  ;;  %v198_v9 = vadd.f32 %v197_v7, %v52_v57  ;;  %v214_v10 = vmax.f32 %v143_v2, 0.0  ;;  %v216_v11 = vmax.f32 %v196_v3, 0.0 }
  0xd2   :  { %v148_v12 = vpop.f32.mrf.mxu0  ;;  %v201_v13 = vpop.f32.mrf.mxu1 }
  0xd3   :  { %v215_v16 = vmax.f32 %v145_v8, 0.0  ;;  %v217_v17 = vmax.f32 %v198_v9, 0.0  ;;  %v226_v24 = vpack.c.bf16 %v214_v10, %v210_v18  ;;  %v228_v25 = vpack.c.bf16 %v216_v11, %v212_v19 }
  0xd4   :  { %v150_v20 = vpop.f32.mrf.mxu0  ;;  %v203_v21 = vpop.f32.mrf.mxu1  ;;  %v149_v32 = vadd.f32 %v148_v12, %v40_v58  ;;  %v202_v33 = vadd.f32 %v201_v13, %v48_v59 }
  0xd5   :  { %v227_v22 = vpack.c.bf16 %v215_v16, %v211_v14  ;;  %v229_v23 = vpack.c.bf16 %v217_v17, %v213_v15  ;;  %v151_v26 = vadd.f32 %v150_v20, %v44_v56  ;;  %v204_v29 = vadd.f32 %v203_v21, %v52_v57 }
  0xd6   :  { %v152_v27 = vpop.f32.mrf.mxu0  ;;  %v205_v28 = vpop.f32.mrf.mxu1  ;;  %v218_v44 = vmax.f32 %v149_v32, 0.0  ;;  %v220_v45 = vmax.f32 %v202_v33, 0.0 }
  0xd7   :  { %v153_v30 = vadd.f32 %v152_v27, %v40_v58  ;;  %v206_v31 = vadd.f32 %v205_v28, %v48_v59  ;;  %529 = vmatprep.mubr.bf16.mxu0 %v227_v22  ;;  %578 = vmatprep.mubr.bf16.mxu1 %v229_v23  ;;  %v219_v40 = vmax.f32 %v151_v26, 0.0  ;;  %v221_v41 = vmax.f32 %v204_v29, 0.0 }
  0xd8   :  { %v154_v34 = vpop.f32.mrf.mxu0  ;;  %v207_v35 = vpop.f32.mrf.mxu1  ;;  %530 = vmatmul.mubr.bf16.vlgmr.msra.gmra.mxu0 %v226_v24  ;;  %579 = vmatmul.mubr.bf16.vlgmr.msra.gmra.mxu1 %v228_v25 }
  0xd9   :  { %v155_v36 = vadd.f32 %v154_v34, %v44_v56  ;;  %v208_v37 = vadd.f32 %v207_v35, %v52_v57  ;;  %v222_v38 = vmax.f32 %v153_v30, 0.0  ;;  %v224_v39 = vmax.f32 %v206_v31, 0.0 }
  0xdb   :  { %v223_v42 = vmax.f32 %v155_v36, 0.0  ;;  %v225_v43 = vmax.f32 %v208_v37, 0.0  ;;  %v230_v48 = vpack.c.bf16 %v222_v38, %v218_v44  ;;  %v232_v49 = vpack.c.bf16 %v224_v39, %v220_v45 }
  0xdd   :  { %v231_v46 = vpack.c.bf16 %v223_v42, %v219_v40  ;;  %v233_v47 = vpack.c.bf16 %v225_v43, %v221_v41 }
  0xdf   :  { %537 = vmatprep.mubr.bf16.mxu0 %v231_v46  ;;  %586 = vmatprep.mubr.bf16.mxu1 %v233_v47 }
  0xe0   :  { %538 = vmatmul.mubr.bf16.gmra.mxu0 %v230_v48  ;;  %587 = vmatmul.mubr.bf16.gmra.mxu1 %v232_v49 }
 0x198   :  { %v772_v50 = vpop.f32.mrf.mxu0  ;;  %v800_v51 = vpop.f32.mrf.mxu1 }
 0x19a   :  { %v773_v53 = vpop.f32.mrf.mxu0  ;;  %v801_v54 = vpop.f32.mrf.mxu1 }
 0x19b   :  { %v774_v55 = vadd.f32 %v773_v53, %v772_v50  ;;  %v802_v59 = vadd.f32 %v801_v54, %v800_v51 }
 0x19c   :  { %v775_v56 = vpop.f32.mrf.mxu0  ;;  %v803_v57 = vpop.f32.mrf.mxu1 }
 0x19d   :  { %v532_v58 = vadd.f32 %v774_v55, %v723_v52 }
 0x19e   :  { %v776_v60 = vpop.f32.mrf.mxu0  ;;  %v804_v61 = vpop.f32.mrf.mxu1 }
 0x19f   :  { %v581_v62 = vadd.f32 %v802_v59, %v532_v58  ;;  %v777_v63 = vadd.f32 %v776_v60, %v775_v56  ;;  %v805_v3 = vadd.f32 %v804_v61, %v803_v57 }
 0x1a0   :  { %v778_v0 = vpop.f32.mrf.mxu0  ;;  %v806_v1 = vpop.f32.mrf.mxu1 }
 0x1a1   :  { %v535_v2 = vadd.f32 %v777_v63, %v723_v52  ;;  %v595_v4 = vmul.f32 %v581_v62, %v581_v62 }
 0x1a2   :  { %v779_v5 = vpop.f32.mrf.mxu0  ;;  %v807_v6 = vpop.f32.mrf.mxu1 }
 0x1a3   :  { %v780_v7 = vadd.f32 %v779_v5, %v778_v0  ;;  %v600_v8 = vsel %vm599_vm1, %v595_v4, 0.0  ;;  %v584_v9 = vadd.f32 %v805_v3, %v535_v2  ;;  %v808_v11 = vadd.f32 %v807_v6, %v806_v1 }
 0x1a4   :  { %601 = vadd.xlane.f32.xlu0 %v600_v8  ;;  %v781_v15 = vpop.f32.mrf.mxu0  ;;  %v809_v17 = vpop.f32.mrf.mxu1 }
 0x1a5   :  { %v540_v10 = vadd.f32 %v780_v7, %v723_v52  ;;  %655 = vrot.lane.b32.xlu1 %v584_v9, %s867_s4  ;;  %v596_v12 = vmul.f32 %v584_v9, %v584_v9 }
 0x1a6   :  { %v782_v16 = vpop.f32.mrf.mxu0  ;;  %v810_v19 = vpop.f32.mrf.mxu1 }
 0x1a7   :  { %v589_v13 = vadd.f32 %v808_v11, %v540_v10  ;;  %v603_v14 = vsel %vm599_vm1, %v596_v12, 0.0  ;;  %v783_v18 = vadd.f32 %v782_v16, %v781_v15  ;;  %v811_v21 = vadd.f32 %v810_v19, %v809_v17 }
 0x1a8   :  { %604 = vadd.xlane.f32.xlu0 %v603_v14 }
 0x1a9   :  { %657 = vrot.lane.b32.xlu1 %v589_v13, %s867_s4  ;;  %v543_v20 = vadd.f32 %v783_v18, %v723_v52  ;;  %v597_v23 = vmul.f32 %v589_v13, %v589_v13 }
 0x1ab   :  { %v592_v22 = vadd.f32 %v811_v21, %v543_v20  ;;  %v606_v24 = vsel %vm599_vm1, %v597_v23, 0.0 }
 0x1ad   :  { %v598_v25 = vmul.f32 %v592_v22, %v592_v22 }
 0x1af   :  { %v609_v26 = vsel %vm599_vm1, %v598_v25, 0.0 }
 0x1be   :  { %653 = vrot.lane.b32.xlu0 %v581_v62, %s867_s4 }
 0x1cd   :  { %607 = vadd.xlane.f32.xlu1 %v606_v24 }
 0x1d1   :  { %610 = vadd.xlane.f32.xlu1 %v609_v26 }
 0x1e2   :  { %659 = vrot.lane.b32.xlu1 %v592_v22, %s867_s4 }
 0x217   :  { %v656_v37 = vpop.permute.xlu1 %655 }
 0x21b   :  { %v658_v39 = vpop.permute.xlu1 %657 }
 0x22d   :  { %v602_v27 = vpop.xlane.xlu0 %601 }
 0x22e   :  { %858 = vrsqrt.f32 %v602_v27  ;;  %vm614_vm2 = vcmp.eq.f32.partialorder %v602_v27, inf  ;;  %v617_v31 = vand.u32 2147483648, %v602_v27  ;;  %vm616_vm3 = vcmp.eq.f32.partialorder %v602_v27, 0.0 }
 0x231   :  { %v605_v28 = vpop.xlane.xlu0 %604 }
 0x232   :  { %860 = vrsqrt.f32 %v605_v28 }
 0x235   :  { %v654_v36 = vpop.permute.xlu0 %653 }
 0x23b   :  { %v859_v29 = vpop.eup %858 }
 0x23c   :  { %v613_v30 = vmul.f32 %v859_v29, %v602_v27 }
 0x23e   :  { %v615_v32 = vsel %vm614_vm2, %v602_v27, %v613_v30 }
 0x23f   :  { %v861_v33 = vpop.eup %860  ;;  %v618_v34 = vsel %vm616_vm3, %v617_v31, %v615_v32 }
 0x240   :  { %v640_v35 = vsub.f32 1.0, %v618_v34 }
 0x242   :  { %645 = vst.msk [vmem:[#allocation2] sm:$0xff] %vm644_vm4, %v640_v35 }
 0x243   :  { %666 = vst.msk [vmem:[#allocation2] sm:$0xff] %vm665_vm5, %v654_v36 }
 0x24a   :  { %v700_v38 = vld [vmem:[#allocation2] sm:$0xff] }
 0x24b   :  { %701 = vst [vmem:[%s1052_s5] sm:$0xff] %v700_v38 }
 0x256   :  { %v608_v40 = vpop.xlane.xlu1 %607 }
 0x257   :  { %862 = vrsqrt.f32 %v608_v40 }
 0x25a   :  { %v611_v41 = vpop.xlane.xlu1 %610 }
 0x25b   :  { %864 = vrsqrt.f32 %v611_v41 }
 0x25e   :  { %v660_v44 = vpop.permute.xlu1 %659 }
 0x264   :  { %v863_v42 = vpop.eup %862 }
 0x268   :  { %v865_v43 = vpop.eup %864 }

</bundles_post_ra>
